<compile_context>
chip_gen: v5e
topology: v5e:2x2
jax: 0.10.0
libtpu: 0.0.40
codegen_flags: <defaults>
</compile_context>

<pallas_src>
import functools

import numpy as np
import jax
import jax.numpy as jnp
from jax.experimental import pallas as pl
from jax.experimental.pallas import tpu as pltpu

_SUBLANES = 8
_LANES = 128


def _round_up(a, b):
    return ((a + b - 1) // b) * b


# --------------------------------------------------------------------------
# Kernels
# --------------------------------------------------------------------------
def _single_block_kernel(x_ref, obj_ref, out_ref, *, log2pi_term):
    """Whole problem in one VMEM block (tiny inputs)."""
    xt = x_ref[...].astype(jnp.float32)            # (B, 8, L)
    per_row = jnp.sum(xt * xt, axis=2)             # (B, 8)   lane reduce (XLU)
    ssq = jnp.sum(per_row, axis=1, keepdims=True)  # (B, 1)   sublane reduce
    out_ref[...] = obj_ref[...] + jnp.float32(log2pi_term) - 0.5 * ssq


def _tiled_kernel(x_ref, obj_ref, out_ref, acc_ref, *, log2pi_term):
    """Grid = (batch tiles [parallel], lane tiles [arbitrary reduction])."""
    k = pl.program_id(1)

    @pl.when(k == 0)
    def _init():
        acc_ref[...] = jnp.zeros_like(acc_ref)

    xt = x_ref[...].astype(jnp.float32)            # (tb, 8, tile_lanes)
    # VPU multiplies + one lane reduce per sublane group; accumulate the
    # per-(sample, sublane) partial sums in a small VMEM scratch.
    acc_ref[...] += jnp.sum(xt * xt, axis=2)       # (tb, 8)

    @pl.when(k == pl.num_programs(1) - 1)
    def _finalize():
        ssq = jnp.sum(acc_ref[...], axis=1, keepdims=True)  # (tb, 1)
        out_ref[...] = obj_ref[...] + jnp.float32(log2pi_term) - 0.5 * ssq


# --------------------------------------------------------------------------
# Wrapper
# --------------------------------------------------------------------------
@functools.partial(
    jax.jit, static_argnames=("max_block_bytes", "single_block_max_bytes")
)
def gaussian_prior_basic_forward(
    x,
    objective,
    *,
    max_block_bytes=8 * 1024 * 1024,         # per x block (double-buffered -> 16 MiB)
    single_block_max_bytes=2 * 1024 * 1024,  # below this, skip the grid entirely
):
    """x: (B, C, H, W) float (NCHW).  objective: (B,) float.

    Returns (x, objective + logp(x)) exactly like GaussianPriorBasic.forward.
    """
    B = x.shape[0]
    D = int(np.prod(x.shape[1:]))
    log2pi_term = -0.5 * float(D) * float(np.log(2.0 * np.pi))

    x_flat = x.reshape(B, D).astype(jnp.float32)
    obj2d = objective.reshape(B, 1).astype(jnp.float32)

    lanes_needed = -(-D // _SUBLANES)  # cdiv(D, 8): lanes/sample once packed

    # ---------------- tiny-input path: one block, no grid --------------------
    lanes_single = _round_up(max(lanes_needed, _LANES), _LANES)
    d_single = _SUBLANES * lanes_single
    if B * d_single * 4 <= single_block_max_bytes:
        xp = x_flat if d_single == D else jnp.pad(x_flat, ((0, 0), (0, d_single - D)))
        x3 = xp.reshape(B, _SUBLANES, lanes_single)
        obj_out = pl.pallas_call(
            functools.partial(_single_block_kernel, log2pi_term=log2pi_term),
            out_shape=jax.ShapeDtypeStruct((B, 1), jnp.float32),
            compiler_params=pltpu.CompilerParams(
                vmem_limit_bytes=48 * 1024 * 1024,
            ),
            cost_estimate=pl.CostEstimate(
                flops=2 * B * D,
                transcendentals=0,
                bytes_accessed=4 * (B * d_single + 2 * B),
            ),
        )(x3, obj2d)
        return x, obj_out.reshape(B)

    # ---------------- tiled path ---------------------------------------------
    # Batch tile: densely packed; only split the batch when it divides evenly
    # (keeps the (8,128) BlockSpec rules satisfied — a full-extent leading dim
    # is always legal). "parallel" batch axis lets v7x shard batch tiles
    # across its two TensorCores.
    if B <= _SUBLANES:
        tb = B
    elif B % _SUBLANES == 0:
        tb = _SUBLANES
    else:
        tb = B
    nb = B // tb

    # Lane tile: largest multiple of 128 with the x block under budget
    # (double-buffered blocks stay well inside v7x's 64 MiB VMEM).
    max_tile_lanes = max(
        _LANES, (max_block_bytes // (tb * _SUBLANES * 4)) // _LANES * _LANES
    )
    tile_lanes = min(max_tile_lanes, _round_up(lanes_needed, _LANES))
    lanes_pad = _round_up(lanes_needed, tile_lanes)
    d_pad = _SUBLANES * lanes_pad
    nk = lanes_pad // tile_lanes

    xp = x_flat if d_pad == D else jnp.pad(x_flat, ((0, 0), (0, d_pad - D)))
    x3 = xp.reshape(B, _SUBLANES, lanes_pad)

    obj_out = pl.pallas_call(
        functools.partial(_tiled_kernel, log2pi_term=log2pi_term),
        out_shape=jax.ShapeDtypeStruct((B, 1), jnp.float32),
        grid_spec=pltpu.PrefetchScalarGridSpec(
            num_scalar_prefetch=0,
            grid=(nb, nk),  # reduction (lane) axis last
            in_specs=[
                pl.BlockSpec((tb, _SUBLANES, tile_lanes), lambda bi, k: (bi, 0, k)),
                pl.BlockSpec((tb, 1), lambda bi, k: (bi, 0)),
            ],
            out_specs=pl.BlockSpec((tb, 1), lambda bi, k: (bi, 0)),
            scratch_shapes=[pltpu.VMEM((tb, _SUBLANES), jnp.float32)],
        ),
        compiler_params=pltpu.CompilerParams(
            dimension_semantics=("parallel", "arbitrary"),
            vmem_limit_bytes=48 * 1024 * 1024,
        ),
        cost_estimate=pl.CostEstimate(
            flops=2 * B * D,
            transcendentals=0,
            bytes_accessed=4 * (B * d_pad + 2 * B),
        ),
    )(x3, obj2d)
    return x, obj_out.reshape(B)


# --------------------------------------------------------------------------
# Reference + test
# --------------------------------------------------------------------------
def _reference(x, objective):
    B = x.shape[0]
    D = int(np.prod(x.shape[1:]))
    log2pi_term = -0.5 * D * np.log(2.0 * np.pi)
    logps = -0.5 * (x.reshape(B, -1) ** 2)
    return x, objective + log2pi_term + logps.sum(axis=-1)


if __name__ == "__main__":
    key = jax.random.PRNGKey(0)
    kx, ko, kx2, ko2 = jax.random.split(key, 4)

    # Shapes implied by the module (NCHW): batch=2, channels=4, spatial=16.
    B, C, H, W = 2, 4, 16, 16
    x = jax.random.normal(kx, (B, C, H, W), dtype=jnp.float32)
    objective = jax.random.normal(ko, (B,), dtype=jnp.float32)

    x_out, obj_out = gaussian_prior_basic_forward(x, objective)
    jax.block_until_ready(obj_out)

    x_ref, obj_ref = _reference(np.asarray(x), np.asarray(objective))
    np.testing.assert_allclose(np.asarray(x_out), x_ref, rtol=1e-6, atol=1e-6)
    np.testing.assert_allclose(np.asarray(obj_out), obj_ref, rtol=1e-5, atol=1e-4)

    # Also exercise the tiled/accumulator path (force small tiles + no
    # single-block shortcut) to make sure it compiles and matches too.
    B2, C2, H2, W2 = 2, 4, 32, 32
    x2 = jax.random.normal(kx2, (B2, C2, H2, W2), dtype=jnp.float32)
    objective2 = jax.random.normal(ko2, (B2,), dtype=jnp.float32)
    x2_out, obj2_out = gaussian_prior_basic_forward(
        x2, objective2, max_block_bytes=8 * 1024, single_block_max_bytes=0
    )
    jax.block_until_ready(obj2_out)
    x2_ref, obj2_ref = _reference(np.asarray(x2), np.asarray(objective2))
    np.testing.assert_allclose(np.asarray(x2_out), x2_ref, rtol=1e-6, atol=1e-6)
    np.testing.assert_allclose(np.asarray(obj2_out), obj2_ref, rtol=1e-5, atol=1e-4)

    print("KERNEL_OK")
</pallas_src>

<mosaic_0001>
module attributes {stable_mosaic.version = 11 : i64} {
  func.func @_single_block_kernel(%arg0: memref<2x8x128xf32, #tpu.memory_space<vmem>>, %arg1: memref<2x1xf32, #tpu.memory_space<vmem>>, %arg2: memref<2x1xf32, #tpu.memory_space<vmem>>) attributes {dimension_semantics = [], scalar_prefetch = 0 : i64, scratch_operands = 0 : i64, tpu.core_type = #tpu.core_type<tc>} {
    %c0 = arith.constant 0 : index
    %c0_0 = arith.constant 0 : index
    %c0_1 = arith.constant 0 : index
    %0 = vector.load %arg0[%c0, %c0_0, %c0_1] : memref<2x8x128xf32, #tpu.memory_space<vmem>>, vector<2x8x128xf32>
    %1 = arith.mulf %0, %0 : vector<2x8x128xf32>
    %cst = arith.constant dense<0.000000e+00> : vector<2x8xf32>
    %2 = vector.multi_reduction <add>, %1, %cst [2] : vector<2x8x128xf32> to vector<2x8xf32>
    %cst_2 = arith.constant dense<0.000000e+00> : vector<2xf32>
    %3 = vector.multi_reduction <add>, %2, %cst_2 [1] : vector<2x8xf32> to vector<2xf32>
    %4 = vector.shape_cast %3 : vector<2xf32> to vector<2x1xf32>
    %c0_3 = arith.constant 0 : index
    %c0_4 = arith.constant 0 : index
    %5 = vector.load %arg1[%c0_3, %c0_4] : memref<2x1xf32, #tpu.memory_space<vmem>>, vector<2x1xf32>
    %cst_5 = arith.constant -940.993041 : f32
    %6 = vector.broadcast %cst_5 : f32 to vector<2x1xf32>
    %7 = arith.addf %5, %6 : vector<2x1xf32>
    %cst_6 = arith.constant 5.000000e-01 : f32
    %8 = vector.broadcast %cst_6 : f32 to vector<2x1xf32>
    %9 = arith.mulf %8, %4 : vector<2x1xf32>
    %10 = arith.subf %7, %9 : vector<2x1xf32>
    %c0_7 = arith.constant 0 : index
    %c0_8 = arith.constant 0 : index
    %11 = vector.load %arg2[%c0_7, %c0_8] : memref<2x1xf32, #tpu.memory_space<vmem>>, vector<2x1xf32>
    tpu.vector_store %arg2[%c0_7, %c0_8], %10 {strides = array<i32>} : memref<2x1xf32, #tpu.memory_space<vmem>>, vector<2x1xf32>,
    return
  }
}

</mosaic_0001>

<bundles_post_ra>
// kernel: gaussian_prior_basic_forward.1
= control target key start
LH: loop header
LB: loop body
LE: loop exit
PB: predicated region body
PF: predicated region fallthrough
CT: control target
= control target key end

     0   :  { %v21_v5 = vlaneseq  ;;  %vm25_vm0 = vcmask 1041409   ;;  %vm28_vm1 = vcmask 58368   ;;  %vm36_vm2 = vcmask 1024   ;;  %s69_s0 = inlined_call_operand.vmem [shape: f32[2,8,128], index: 0, kind: input, shape index: {}]   ;;  %s70_s1 = inlined_call_operand.vmem [shape: f32[2,1], index: 1, kind: input, shape index: {}]   ;;  %s71_s2 = inlined_call_operand.vmem [shape: f32[2,1], index: 2, kind: output, shape index: {}]  }
   0x1   :  { %v11_v0 = vld [vmem:[%s69_s0] sm:$0xff]  ;;  %v12_v2 = vld [vmem:[%s69_s0 + $0x8] sm:$0xff] }
   0x2   :  { %v13_v1 = vmul.f32 %v11_v0, %v11_v0  ;;  %v14_v3 = vmul.f32 %v12_v2, %v12_v2  ;;  %v22_v6 = vand.u32 127, %v21_v5  ;;  %v32_v12 = vld [vmem:[%s70_s1] sm:$0x3] }
   0x3   :  { %v33_v13 = vadd.f32 -940.99304, %v32_v12 }
   0x4   :  { %15 = vadd.xlane.f32.xlu0 %v13_v1 }
   0xc   :  { %17 = vadd.xlane.f32.xlu0 %v14_v3 }
  0x77   :  { %v16_v4 = vpop.xlane.xlu0 %15 }
  0x78   :  { %v23_v8 = vperm.slane %v16_v4, %v22_v6 }
  0x7f   :  { %v18_v7 = vpop.xlane.xlu0 %17 }
  0x80   :  { %v24_v9 = vperm.slane %v18_v7, %v22_v6 }
  0x82   :  { %v26_v10 = vsel %vm25_vm0, %v24_v9, %v23_v8 }
  0x83   :  { %v29_v11 = vsel %vm28_vm1, %v26_v10, 0.0 }
  0x84   :  { %30 = vadd.xlane.f32.xlu1 %v29_v11 }
  0xf7   :  { %v31_v14 = vpop.xlane.xlu1 %30 }
  0xf8   :  { %v34_v15 = vmul.f32 0.5, %v31_v14 }
  0xfa   :  { %v35_v16 = vsub.f32 %v33_v13, %v34_v15 }
  0xfc   :  { %37 = vst.msk [vmem:[%s71_s2] sm:$0x3] %vm36_vm2, %v35_v16 }

</bundles_post_ra>
